<compile_context>
chip_gen: v7x
topology: tpu7x:2x2x1
jax: 0.10.0
libtpu: 0.0.40
codegen_flags: <defaults>
</compile_context>

<pallas_src>
import jax
import jax.numpy as jnp
from jax.experimental import pallas as pl
from jax.experimental.pallas import tpu as pltpu

K_IN = 784
H1 = 128
H2 = 64
N_OUT = 10
OUT_PAD = 16      # lane-padded output width; (tb, 16) block == full array dim


def mlp_kernel(x_ref, w1_ref, b1_ref, w2_ref, b2_ref, w3_ref, b3_ref, o_ref):
    # x arrives unpadded f32 (tb, 784); cast to bf16 just before the MXU.
    x = x_ref[...].astype(jnp.bfloat16)

    # Layer 1: (tb, 784) bf16 @ (784, 128) bf16 -> f32 acc; bias + ReLU in f32.
    h1 = jnp.dot(x, w1_ref[...], preferred_element_type=jnp.float32)
    h1 = jnp.maximum(h1 + b1_ref[...], 0.0)

    # Layer 2: (tb, 128) @ (128, 64)
    h2 = jnp.dot(h1.astype(jnp.bfloat16), w2_ref[...],
                 preferred_element_type=jnp.float32)
    h2 = jnp.maximum(h2 + b2_ref[...], 0.0)

    # Output layer padded to 16 lanes.  Pad columns have zero weights and bias
    # -1e30, and the bias add / exp stay in f32, so pad lanes exp to exactly 0.
    logits = jnp.dot(h2.astype(jnp.bfloat16), w3_ref[...],
                     preferred_element_type=jnp.float32)
    logits = logits + b3_ref[...]
    m = jnp.max(logits, axis=-1, keepdims=True)
    e = jnp.exp(logits - m)
    denom = jnp.sum(e, axis=-1, keepdims=True)
    # Exact divide: kernel is memory-bound, the VPU divide is free, and rows
    # then sum to 1 to f32 precision.
    o_ref[...] = (e / denom).astype(o_ref.dtype)


def init_params(key):
    """PyTorch-style init U(-1/sqrt(fan_in), 1/sqrt(fan_in)).

    Weights stored as (in_features, out_features) (transpose of PyTorch's
    (out, in)); biases as (1, out_features)."""
    dims = [(K_IN, H1), (H1, H2), (H2, N_OUT)]
    params = []
    for fan_in, fan_out in dims:
        key, kw, kb = jax.random.split(key, 3)
        bound = 1.0 / jnp.sqrt(jnp.float32(fan_in))
        w = jax.random.uniform(kw, (fan_in, fan_out), jnp.float32, -bound, bound)
        b = jax.random.uniform(kb, (1, fan_out), jnp.float32, -bound, bound)
        params += [w, b]
    return tuple(params)


def prepare_params(params):
    """Host-side weight prep (once, not per forward): cast weights to bf16,
    pad the output layer to 16 lanes (pad bias lanes = -1e30, kept f32)."""
    w1, b1, w2, b2, w3, b3 = params
    w1p = w1.astype(jnp.bfloat16)
    w2p = w2.astype(jnp.bfloat16)
    w3p = jnp.pad(w3, ((0, 0), (0, OUT_PAD - N_OUT))).astype(jnp.bfloat16)
    b3p = jnp.pad(b3, ((0, 0), (0, OUT_PAD - N_OUT)),
                  constant_values=-1e30).astype(jnp.float32)
    return (w1p, b1.astype(jnp.float32), w2p, b2.astype(jnp.float32), w3p, b3p)


def _ceil_to(x, m):
    return ((x + m - 1) // m) * m


def _choose_tb(batch, max_tb=2048):
    """Batch-tile size: a multiple of 16 (bf16 sublane packing), at most
    max_tb, with an even tile count >= 2 once the batch is big enough so the
    ("parallel",) batch axis shards across both v7x TensorCores, and chosen
    to keep b_pad - B padding waste small."""
    b16 = _ceil_to(batch, 16)
    if b16 <= 256:
        # Tiny batch: one tile; per-grid-step overhead (~0.35 us) would
        # otherwise dominate and v7x TC sharding wouldn't pay for itself.
        return b16
    n_tiles = max(2, (b16 + max_tb - 1) // max_tb)
    if n_tiles % 2:
        n_tiles += 1          # even tile count -> balanced across 2 TCs
    return _ceil_to((b16 + n_tiles - 1) // n_tiles, 16)


def net_forward(x, prepared_params):
    w1, b1, w2, b2, w3, b3 = prepared_params
    B = x.shape[0]
    tb = _choose_tb(B)
    n_tiles = pl.cdiv(B, tb)
    b_pad = n_tiles * tb
    if b_pad != B:
        # Only the batch dim is padded (no K pad, no dtype cast pass over x).
        x = jnp.pad(x, ((0, b_pad - B), (0, 0)))

    def resident(shape):  # weight/bias blocks stay VMEM-resident across steps
        return pl.BlockSpec(shape, lambda i: (0,) * len(shape))

    # Real per-call traffic / work (unpadded f32 x, bf16 weights, 16-wide out).
    flops = 2 * b_pad * (K_IN * H1 + H1 * H2 + H2 * OUT_PAD)
    bytes_accessed = (b_pad * K_IN * 4
                      + (w1.size + w2.size + w3.size) * 2
                      + (b1.size + b2.size + b3.size) * 4
                      + b_pad * OUT_PAD * 4)

    out = pl.pallas_call(
        mlp_kernel,
        out_shape=jax.ShapeDtypeStruct((b_pad, OUT_PAD), jnp.float32),
        grid=(n_tiles,),
        in_specs=[
            pl.BlockSpec((tb, K_IN), lambda i: (i, 0)),
            resident(w1.shape), resident(b1.shape),
            resident(w2.shape), resident(b2.shape),
            resident(w3.shape), resident(b3.shape),
        ],
        out_specs=pl.BlockSpec((tb, OUT_PAD), lambda i: (i, 0)),
        compiler_params=pltpu.CompilerParams(
            dimension_semantics=("parallel",),
            vmem_limit_bytes=32 * 1024 * 1024),
        cost_estimate=pl.CostEstimate(
            flops=flops,
            transcendentals=b_pad * OUT_PAD,
            bytes_accessed=bytes_accessed),
    )(x, w1, b1, w2, b2, w3, b3)
    return out[:B, :N_OUT]


def net_forward_ref(x, params):
    """Pure-JAX f32 reference matching the PyTorch module semantics."""
    w1, b1, w2, b2, w3, b3 = params
    h1 = jnp.maximum(x @ w1 + b1, 0.0)
    h2 = jnp.maximum(h1 @ w2 + b2, 0.0)
    return jax.nn.softmax(h2 @ w3 + b3, axis=1)


if __name__ == "__main__":
    key = jax.random.PRNGKey(0)
    key, kx = jax.random.split(key)
    B = 8
    x = jax.random.normal(kx, (B, K_IN), jnp.float32)

    params = init_params(key)
    prepared = prepare_params(params)

    out = net_forward(x, prepared)
    out = jax.block_until_ready(out)

    # Sanity: shape, softmax rows sum to 1 (exact divide -> tight), and
    # agreement with the f32 reference (bf16 weights/activations -> loose).
    assert out.shape == (B, N_OUT)
    row_sums = jnp.sum(out, axis=1)
    assert jnp.allclose(row_sums, jnp.ones((B,), jnp.float32), atol=1e-4)
    ref = net_forward_ref(x, params)
    assert jnp.allclose(out, ref, atol=5e-2)

    print("KERNEL_OK")
</pallas_src>

<mosaic_0001>
module attributes {stable_mosaic.version = 11 : i64} {
  func.func @mlp_kernel(%arg0: i32, %arg1: memref<16x784xf32, #tpu.memory_space<vmem>>, %arg2: memref<784x128xbf16, #tpu.memory_space<vmem>>, %arg3: memref<1x128xf32, #tpu.memory_space<vmem>>, %arg4: memref<128x64xbf16, #tpu.memory_space<vmem>>, %arg5: memref<1x64xf32, #tpu.memory_space<vmem>>, %arg6: memref<64x16xbf16, #tpu.memory_space<vmem>>, %arg7: memref<1x16xf32, #tpu.memory_space<vmem>>, %arg8: memref<16x16xf32, #tpu.memory_space<vmem>>) attributes {dimension_semantics = [#tpu.dimension_semantics<parallel>], iteration_bounds = array<i64: 1>, scalar_prefetch = 0 : i64, scratch_operands = 0 : i64, tpu.core_type = #tpu.core_type<tc>, window_params = [{transform_indices = @transform_0, window_bounds = array<i64: 16, 784>}, {pipeline_mode = #tpu.pipeline_mode<synchronous>, transform_indices = @transform_1, window_bounds = array<i64: 784, 128>}, {pipeline_mode = #tpu.pipeline_mode<synchronous>, transform_indices = @transform_2, window_bounds = array<i64: 1, 128>}, {pipeline_mode = #tpu.pipeline_mode<synchronous>, transform_indices = @transform_3, window_bounds = array<i64: 128, 64>}, {pipeline_mode = #tpu.pipeline_mode<synchronous>, transform_indices = @transform_4, window_bounds = array<i64: 1, 64>}, {pipeline_mode = #tpu.pipeline_mode<synchronous>, transform_indices = @transform_5, window_bounds = array<i64: 64, 16>}, {pipeline_mode = #tpu.pipeline_mode<synchronous>, transform_indices = @transform_6, window_bounds = array<i64: 1, 16>}, {transform_indices = @transform_7, window_bounds = array<i64: 16, 16>}]} {
    %c0 = arith.constant 0 : index
    %c0_0 = arith.constant 0 : index
    %0 = vector.load %arg1[%c0, %c0_0] : memref<16x784xf32, #tpu.memory_space<vmem>>, vector<16x784xf32>
    %1 = arith.truncf %0 : vector<16x784xf32> to vector<16x784xbf16>
    %c0_1 = arith.constant 0 : index
    %c0_2 = arith.constant 0 : index
    %2 = vector.load %arg2[%c0_1, %c0_2] : memref<784x128xbf16, #tpu.memory_space<vmem>>, vector<784x128xbf16>
    %cst = arith.constant dense<0.000000e+00> : vector<16x128xf32>
    %3 = tpu.matmul %1, %2, %cst {dimension_numbers = #tpu.dot_dimension_numbers<[1], [0], [0], [1], [0, 0, 1, 1], [], []>} : vector<16x784xbf16>, vector<784x128xbf16>, vector<16x128xf32> -> vector<16x128xf32>
    %c0_3 = arith.constant 0 : index
    %c0_4 = arith.constant 0 : index
    %4 = vector.load %arg3[%c0_3, %c0_4] : memref<1x128xf32, #tpu.memory_space<vmem>>, vector<1x128xf32>
    %5 = vector.broadcast %4 : vector<1x128xf32> to vector<16x128xf32>
    %6 = arith.addf %3, %5 : vector<16x128xf32>
    %cst_5 = arith.constant 0.000000e+00 : f32
    %7 = vector.broadcast %cst_5 : f32 to vector<16x128xf32>
    %8 = arith.maximumf %6, %7 : vector<16x128xf32>
    %9 = arith.truncf %8 : vector<16x128xf32> to vector<16x128xbf16>
    %c0_6 = arith.constant 0 : index
    %c0_7 = arith.constant 0 : index
    %10 = vector.load %arg4[%c0_6, %c0_7] : memref<128x64xbf16, #tpu.memory_space<vmem>>, vector<128x64xbf16>
    %cst_8 = arith.constant dense<0.000000e+00> : vector<16x64xf32>
    %11 = tpu.matmul %9, %10, %cst_8 {dimension_numbers = #tpu.dot_dimension_numbers<[1], [0], [0], [1], [0, 0, 1, 1], [], []>} : vector<16x128xbf16>, vector<128x64xbf16>, vector<16x64xf32> -> vector<16x64xf32>
    %c0_9 = arith.constant 0 : index
    %c0_10 = arith.constant 0 : index
    %12 = vector.load %arg5[%c0_9, %c0_10] : memref<1x64xf32, #tpu.memory_space<vmem>>, vector<1x64xf32>
    %13 = vector.broadcast %12 : vector<1x64xf32> to vector<16x64xf32>
    %14 = arith.addf %11, %13 : vector<16x64xf32>
    %cst_11 = arith.constant 0.000000e+00 : f32
    %15 = vector.broadcast %cst_11 : f32 to vector<16x64xf32>
    %16 = arith.maximumf %14, %15 : vector<16x64xf32>
    %17 = arith.truncf %16 : vector<16x64xf32> to vector<16x64xbf16>
    %c0_12 = arith.constant 0 : index
    %c0_13 = arith.constant 0 : index
    %18 = vector.load %arg6[%c0_12, %c0_13] : memref<64x16xbf16, #tpu.memory_space<vmem>>, vector<64x16xbf16>
    %cst_14 = arith.constant dense<0.000000e+00> : vector<16x16xf32>
    %19 = tpu.matmul %17, %18, %cst_14 {dimension_numbers = #tpu.dot_dimension_numbers<[1], [0], [0], [1], [0, 0, 1, 1], [], []>} : vector<16x64xbf16>, vector<64x16xbf16>, vector<16x16xf32> -> vector<16x16xf32>
    %c0_15 = arith.constant 0 : index
    %c0_16 = arith.constant 0 : index
    %20 = vector.load %arg7[%c0_15, %c0_16] : memref<1x16xf32, #tpu.memory_space<vmem>>, vector<1x16xf32>
    %21 = vector.broadcast %20 : vector<1x16xf32> to vector<16x16xf32>
    %22 = arith.addf %19, %21 : vector<16x16xf32>
    %cst_17 = arith.constant dense<0xFF800000> : vector<16xf32>
    %23 = vector.multi_reduction <maximumf>, %22, %cst_17 [1] : vector<16x16xf32> to vector<16xf32>
    %24 = vector.shape_cast %23 : vector<16xf32> to vector<16x1xf32>
    %25 = vector.broadcast %24 : vector<16x1xf32> to vector<16x16xf32>
    %26 = arith.subf %22, %25 : vector<16x16xf32>
    %27 = math.exp %26 : vector<16x16xf32>
    %cst_18 = arith.constant dense<0.000000e+00> : vector<16xf32>
    %28 = vector.multi_reduction <add>, %27, %cst_18 [1] : vector<16x16xf32> to vector<16xf32>
    %29 = vector.shape_cast %28 : vector<16xf32> to vector<16x1xf32>
    %30 = vector.broadcast %29 : vector<16x1xf32> to vector<16x16xf32>
    %31 = arith.divf %27, %30 : vector<16x16xf32>
    %c0_19 = arith.constant 0 : index
    %c0_20 = arith.constant 0 : index
    %32 = vector.load %arg8[%c0_19, %c0_20] : memref<16x16xf32, #tpu.memory_space<vmem>>, vector<16x16xf32>
    tpu.vector_store %arg8[%c0_19, %c0_20], %31 {strides = array<i32>} : memref<16x16xf32, #tpu.memory_space<vmem>>, vector<16x16xf32>,
    return
  }
  func.func @transform_0(%arg0: i32) -> (i32, i32) {
    %c0_i32 = arith.constant 0 : i32
    %c0_i32_0 = arith.constant 0 : i32
    return %arg0, %c0_i32 : i32, i32
  }
  func.func @transform_1(%arg0: i32) -> (i32, i32) {
    %c0_i32 = arith.constant 0 : i32
    %c0_i32_0 = arith.constant 0 : i32
    %c0_i32_1 = arith.constant 0 : i32
    return %c0_i32, %c0_i32_0 : i32, i32
  }
  func.func @transform_2(%arg0: i32) -> (i32, i32) {
    %c0_i32 = arith.constant 0 : i32
    %c0_i32_0 = arith.constant 0 : i32
    %c0_i32_1 = arith.constant 0 : i32
    return %c0_i32, %c0_i32_0 : i32, i32
  }
  func.func @transform_3(%arg0: i32) -> (i32, i32) {
    %c0_i32 = arith.constant 0 : i32
    %c0_i32_0 = arith.constant 0 : i32
    %c0_i32_1 = arith.constant 0 : i32
    return %c0_i32, %c0_i32_0 : i32, i32
  }
  func.func @transform_4(%arg0: i32) -> (i32, i32) {
    %c0_i32 = arith.constant 0 : i32
    %c0_i32_0 = arith.constant 0 : i32
    %c0_i32_1 = arith.constant 0 : i32
    return %c0_i32, %c0_i32_0 : i32, i32
  }
  func.func @transform_5(%arg0: i32) -> (i32, i32) {
    %c0_i32 = arith.constant 0 : i32
    %c0_i32_0 = arith.constant 0 : i32
    %c0_i32_1 = arith.constant 0 : i32
    return %c0_i32, %c0_i32_0 : i32, i32
  }
  func.func @transform_6(%arg0: i32) -> (i32, i32) {
    %c0_i32 = arith.constant 0 : i32
    %c0_i32_0 = arith.constant 0 : i32
    %c0_i32_1 = arith.constant 0 : i32
    return %c0_i32, %c0_i32_0 : i32, i32
  }
  func.func @transform_7(%arg0: i32) -> (i32, i32) {
    %c0_i32 = arith.constant 0 : i32
    %c0_i32_0 = arith.constant 0 : i32
    return %arg0, %c0_i32 : i32, i32
  }
}

</mosaic_0001>

<bundles_post_ra>
// kernel: tpu_custom_call.1
= control target key start
LH: loop header
LB: loop body
LE: loop exit
PB: predicated region body
PF: predicated region fallthrough
CT: control target
= control target key end

     0   :  { %12 = vsyncpa [#allocation3], 0  ;;  %s1369_s0 = inlined_call_operand.vmem [shape: f32[16,784], index: 0, kind: input, shape index: {}]   ;;  %s1370_s1 = inlined_call_operand.hbm [shape: bf16[784,128], index: 1, kind: input, shape index: {}]   ;;  %s1371_s2 = inlined_call_operand.vmem [shape: f32[1,128], index: 2, kind: input, shape index: {}]   ;;  %s1372_s3 = inlined_call_operand.vmem [shape: bf16[128,64], index: 3, kind: input, shape index: {}]   ;;  %s1373_s4 = inlined_call_operand.vmem [shape: f32[1,64], index: 4, kind: input, shape index: {}]   ;;  %s1374_s5 = inlined_call_operand.vmem [shape: bf16[64,16], index: 5, kind: input, shape index: {}]   ;;  %s1375_s6 = inlined_call_operand.vmem [shape: f32[1,16], index: 6, kind: input, shape index: {}]   ;;  %s1376_s7 = inlined_call_operand.hbm [shape: f32[16,16], index: 7, kind: output, shape index: {}]  }
   0x1   :  { %13 = vsyncpa [#allocation4], 0  ;;  %s1184_s24 = smov [#allocation2]   ;;  %s1136_s28 = scalar_lea.hbm %s1370_s1, 6272 }
   0x2   :  { %s21_s25 = sshll.u32 %s1184_s24, 4  ;;  %p1137_p0 = scmp.ne.s32.totalorder %s1370_s1, %s1136_s28  ;;  %s22_s25 = int_to_ptr.vmem [resolvable:$true] %s21_s25 }
   0x3   :  { %p1140_p1 = scmp.lt.u32.totalorder %s1136_s28, %s1370_s1 }
   0x5   :  { %p1142_p2 = pnand %p1140_p1, %p1137_p0 }
   0x7   :  { %1145 = shalt.err (!%p1142_p2)
}
   0x8   :  { %s1146_s10 = scalar_lea.vmem %s22_s25, 6272  ;;  %p1151_p4 = scmp.lt.s32.totalorder %s22_s25, %s22_s25 }
   0x9   :  { %p1147_p3 = scmp.ne.s32.totalorder %s22_s25, %s1146_s10  ;;  %p1152_p5 = scmp.lt.s32.totalorder %s1146_s10, %s1146_s10 }
   0xb   :  { %p1153_p6 = por %p1152_p5, %p1151_p4 }
   0xd   :  { %p1154_p7 = pnand %p1153_p6, %p1147_p3 }
   0xf   :  { %1157 = shalt.err (!%p1154_p7)
}
  0x10   :  { %s1185_s11 = smov 64   ;;  %s1186_s12 = smov 4  }
  0x11   :  { %27 = dma.hbm_to_vmem [thread:$0]  %s1370_s1, 6272, %s22_s25, [#allocation3], %s1185_s11, %s1185_s11, %s1186_s12  }
  0x12   :  { %1180 = dma.done.wait [#allocation3], 6272  }
  0x13   :  { %1181 = vsyncadd [#allocation3], 4294961024  ;;  %v1067_v0 = vld [vmem:[#allocation2 + $0x40] sm:$0xff]   ;;  %v1071_v4 = vld [vmem:[#allocation2 + $0x48] sm:$0xff]   ;;  %v1187_v43 = vmov 0.0   ;;  %vm1188_vm0 = vmmov 0  }
  0x14   :  { %v1068_v1 = vld [vmem:[#allocation2] sm:$0xff]   ;;  %939 = vmatprep.subr.bf16.mxu0 %v1067_v0  ;;  %v1072_v5 = vld [vmem:[#allocation2 + $0x8] sm:$0xff]   ;;  %v1075_v8 = vld [vmem:[#allocation2 + $0x50] sm:$0xff]   ;;  %vm462_vm1 = vcmask 130048   ;;  %vm787_vm2 = vcmask 523264  }
  0x15   :  { %v1069_v2 = vld [vmem:[#allocation2 + $0xc0] sm:$0xff]   ;;  %940 = vmatpush3.bf16.msra.mxu0 %v1068_v1  ;;  %v1073_v6 = vld [vmem:[#allocation2 + $0xc8] sm:$0xff]   ;;  %v1076_v9 = vld [vmem:[#allocation2 + $0x10] sm:$0xff]  }
  0x16   :  { %v1070_v3 = vld [vmem:[#allocation2 + $0x80] sm:$0xff]   ;;  %961 = vmatprep.subr.bf16.mxu1 %v1069_v2  ;;  %941 = vmatprep.subr.bf16.mxu0 %v1071_v4  ;;  %v1074_v7 = vld [vmem:[#allocation2 + $0x88] sm:$0xff]   ;;  %v1077_v10 = vld [vmem:[#allocation2 + $0xd0] sm:$0xff]  }
  0x17   :  { %962 = vmatpush3.bf16.msra.mxu1 %v1070_v3  ;;  %v1078_v11 = vld [vmem:[#allocation2 + $0x90] sm:$0xff]   ;;  %v1079_v12 = vld [vmem:[#allocation2 + $0x58] sm:$0xff]   ;;  %v1083_v16 = vld [vmem:[#allocation2 + $0x60] sm:$0xff]  }
  0x18   :  { %963 = vmatprep.subr.bf16.mxu1 %v1073_v6  ;;  %v1080_v13 = vld [vmem:[#allocation2 + $0x18] sm:$0xff]   ;;  %v1084_v17 = vld [vmem:[#allocation2 + $0x20] sm:$0xff]   ;;  %v1087_v20 = vld [vmem:[#allocation2 + $0x68] sm:$0xff]  }
  0x19   :  { %942 = vmatpush3.bf16.msra.mxu0 %v1072_v5  ;;  %v1081_v14 = vld [vmem:[#allocation2 + $0xd8] sm:$0xff]   ;;  %v1085_v18 = vld [vmem:[#allocation2 + $0xe0] sm:$0xff]   ;;  %v1088_v21 = vld [vmem:[#allocation2 + $0x28] sm:$0xff]  }
  0x1a   :  { %943 = vmatprep.subr.bf16.mxu0 %v1075_v8  ;;  %v1082_v15 = vld [vmem:[#allocation2 + $0x98] sm:$0xff]   ;;  %v1086_v19 = vld [vmem:[#allocation2 + $0xa0] sm:$0xff]   ;;  %v1089_v22 = vld [vmem:[#allocation2 + $0xe8] sm:$0xff]  }
  0x1b   :  { %964 = vmatpush3.bf16.msra.mxu1 %v1074_v7  ;;  %v1090_v23 = vld [vmem:[#allocation2 + $0xa8] sm:$0xff]   ;;  %v1091_v24 = vld [vmem:[#allocation2 + $0x70] sm:$0xff]   ;;  %v1095_v28 = vld [vmem:[#allocation2 + $0x78] sm:$0xff]  }
  0x1c   :  { %965 = vmatprep.subr.bf16.mxu1 %v1077_v10  ;;  %v1092_v25 = vld [vmem:[#allocation2 + $0x30] sm:$0xff]   ;;  %v1096_v29 = vld [vmem:[#allocation2 + $0x38] sm:$0xff]   ;;  %v43_v31 = vld [vmem:[%s1369_s0 + $0x8] sm:$0xff] }
  0x1d   :  { %944 = vmatpush3.bf16.msra.mxu0 %v1076_v9  ;;  %v1093_v26 = vld [vmem:[#allocation2 + $0xf0] sm:$0xff]   ;;  %v1097_v30 = vld [vmem:[#allocation2 + $0xf8] sm:$0xff]   ;;  %v50_v32 = vld [vmem:[%s1369_s0 + $0x40] sm:$0xff] }
  0x1e   :  { %945 = vmatprep.subr.bf16.mxu0 %v1079_v12  ;;  %v1094_v27 = vld [vmem:[#allocation2 + $0xb0] sm:$0xff]   ;;  %v57_v33 = vpack.c.bf16 %v50_v32, %v43_v31  ;;  %v1098_v34 = vld [vmem:[#allocation2 + $0xb8] sm:$0xff]   ;;  %v42_v35 = vld [vmem:[%s1369_s0] sm:$0xff] }
  0x1f   :  { %966 = vmatpush3.bf16.msra.mxu1 %v1078_v11  ;;  %v49_v36 = vld [vmem:[%s1369_s0 + $0x38] sm:$0xff]  ;;  %v1099_v38 = vld [vmem:[#allocation2 + $0x140] sm:$0xff]   ;;  %v52_v40 = vld [vmem:[%s1369_s0 + $0x50] sm:$0xff] }
  0x20   :  { %967 = vmatprep.subr.bf16.mxu1 %v1081_v14  ;;  %498 = vmatprep.mubr.bf16.mxu0 %v57_v33  ;;  %v56_v37 = vpack.c.bf16 %v49_v36, %v42_v35  ;;  %v45_v39 = vld [vmem:[%s1369_s0 + $0x18] sm:$0xff]  ;;  %v1100_v42 = vld [vmem:[#allocation2 + $0x100] sm:$0xff]   ;;  %v44_v44 = vld [vmem:[%s1369_s0 + $0x10] sm:$0xff] }
  0x21   :  { %946 = vmatpush3.bf16.msra.mxu0 %v1080_v13  ;;  %v59_v41 = vpack.c.bf16 %v52_v40, %v45_v39  ;;  %v51_v45 = vld [vmem:[%s1369_s0 + $0x48] sm:$0xff]  ;;  %v1103_v49 = vld [vmem:[#allocation2 + $0x150] sm:$0xff]   ;;  %v1105_v51 = vld [vmem:[#allocation2 + $0x158] sm:$0xff]  }
  0x22   :  { %947 = vmatprep.subr.bf16.mxu0 %v1083_v16  ;;  %v58_v46 = vpack.c.bf16 %v51_v45, %v44_v44  ;;  %v1101_v47 = vld [vmem:[#allocation2 + $0x148] sm:$0xff]   ;;  %v1104_v50 = vld [vmem:[#allocation2 + $0x110] sm:$0xff]   ;;  %v1106_v52 = vld [vmem:[#allocation2 + $0x118] sm:$0xff]  }
  0x23   :  { %968 = vmatpush3.bf16.msra.mxu1 %v1082_v15  ;;  %539 = vmatprep.mubr.bf16.mxu1 %v59_v41  ;;  %v1102_v48 = vld [vmem:[#allocation2 + $0x108] sm:$0xff]   ;;  %v1107_v53 = vld [vmem:[#allocation2 + $0x160] sm:$0xff]   ;;  %v1111_v59 = vld [vmem:[#allocation2 + $0x170] sm:$0xff]  }
  0x24   :  { %969 = vmatprep.subr.bf16.mxu1 %v1085_v18  ;;  %v1108_v54 = vld [vmem:[#allocation2 + $0x120] sm:$0xff]   ;;  %v1109_v55 = vld [vmem:[#allocation2 + $0x168] sm:$0xff]   ;;  %v48_v62 = vld [vmem:[%s1369_s0 + $0x30] sm:$0xff] }
  0x25   :  { %948 = vmatpush3.bf16.msra.mxu0 %v1084_v17  ;;  %v1115_v56 = vld [vmem:[#allocation2 + $0x180] sm:$0xff]   ;;  %v47_v57 = vld [vmem:[%s1369_s0 + $0x28] sm:$0xff]  ;;  %v1112_v1 = vld [vmem:[#allocation2 + $0x130] sm:$0xff]  }
  0x26   :  { %949 = vmatprep.subr.bf16.mxu0 %v1087_v20  ;;  %v1110_v58 = vld [vmem:[#allocation2 + $0x128] sm:$0xff]   ;;  %v54_v60 = vld [vmem:[%s1369_s0 + $0x60] sm:$0xff]  ;;  %v1113_v2 = vld [vmem:[#allocation2 + $0x178] sm:$0xff]  }
  0x27   :  { %970 = vmatpush3.bf16.msra.mxu1 %v1086_v19  ;;  %v61_v61 = vpack.c.bf16 %v54_v60, %v47_v57  ;;  %v55_v63 = vld [vmem:[%s1369_s0 + $0x68] sm:$0xff]  ;;  %v1114_v3 = vld [vmem:[#allocation2 + $0x138] sm:$0xff]   ;;  %v46_v4 = vld [vmem:[%s1369_s0 + $0x20] sm:$0xff] }
  0x28   :  { %971 = vmatprep.subr.bf16.mxu1 %v1089_v22  ;;  %v62_v0 = vpack.c.bf16 %v55_v63, %v48_v62  ;;  %v53_v5 = vld [vmem:[%s1369_s0 + $0x58] sm:$0xff]  ;;  %v1116_v7 = vld [vmem:[%s1372_s3] sm:$0xff]   ;;  %v1117_v8 = vld [vmem:[%s1372_s3 + $0x8] sm:$0xff]  }
  0x29   :  { %950 = vmatpush3.bf16.msra.mxu0 %v1088_v21  ;;  %v60_v6 = vpack.c.bf16 %v53_v5, %v46_v4  ;;  %v1118_v9 = vld [vmem:[%s1372_s3 + $0x10] sm:$0xff]   ;;  %v1119_v10 = vld [vmem:[%s1372_s3 + $0x18] sm:$0xff]   ;;  %v1120_v11 = vld [vmem:[%s1372_s3 + $0x20] sm:$0xff]  }
  0x2a   :  { %951 = vmatprep.subr.bf16.mxu0 %v1091_v24  ;;  %v1121_v12 = vld [vmem:[%s1372_s3 + $0x28] sm:$0xff]   ;;  %v1122_v13 = vld [vmem:[%s1372_s3 + $0x30] sm:$0xff]   ;;  %v1123_v14 = vld [vmem:[%s1372_s3 + $0x38] sm:$0xff]  }
  0x2b   :  { %972 = vmatpush3.bf16.msra.mxu1 %v1090_v23  ;;  %v1124_v15 = vld [vmem:[%s1374_s5] sm:$0xff]   ;;  %v1125_v16 = vld [vmem:[%s1374_s5 + $0x8] sm:$0xff]  }
  0x2c   :  { %973 = vmatprep.subr.bf16.mxu1 %v1093_v26  ;;  %v873_v18 = vld [vmem:[%s1371_s2] ss:$0 sm:$0xff] }
  0x2d   :  { %952 = vmatpush3.bf16.msra.mxu0 %v1092_v25 }
  0x2e   :  { %953 = vmatprep.subr.bf16.mxu0 %v1095_v28 }
  0x2f   :  { %974 = vmatpush3.bf16.msra.mxu1 %v1094_v27 }
  0x30   :  { %975 = vmatprep.subr.bf16.mxu1 %v1097_v30 }
  0x31   :  { %954 = vmatpush3.bf16.msra.mxu0 %v1096_v29 }
  0x32   :  { %983 = vmatprep.subr.bf16.mxu0 %v1099_v38 }
  0x33   :  { %976 = vmatpush3.bf16.msra.mxu1 %v1098_v34 }
  0x34   :  { %1021 = vmatprep.subr.bf16.mxu1 %v1187_v43  ;;  %499 = vmatmul.mubr.bf16.vlgmr.msra.gmra.mrb[0].mxu0 %v56_v37 }
  0x35   :  { %984 = vmatpush3.bf16.msra.mxu0 %v1100_v42  ;;  %580 = vmatprep.mubr.bf16.mxu0 %v61_v61 }
  0x36   :  { %540 = vmatmul.mubr.bf16.vlgmr.msra.gmra.mrb[0].mxu1 %v58_v46  ;;  %985 = vmatprep.subr.bf16.mxu0 %v1101_v47 }
  0x37   :  { %1023 = vmatprep.mubr.msk.bf16.mxu1 %vm1188_vm0, %v1187_v43  ;;  %1022 = vmatpush3.bf16.msra.mxu1 %v1115_v56 }
  0x38   :  { %1027 = vmatprep.subr.bf16.mxu1 %v1187_v43 }
  0x39   :  { %986 = vmatpush3.bf16.msra.mxu0 %v1102_v48 }
  0x3a   :  { %987 = vmatprep.subr.bf16.mxu0 %v1103_v49 }
  0x3d   :  { %988 = vmatpush3.bf16.msra.mxu0 %v1104_v50 }
  0x3e   :  { %989 = vmatprep.subr.bf16.mxu0 %v1105_v51  ;;  %1024 = vmatmul.mubr.msk.bf16.vlgmr.msra.gmra.mrb[4].mxu1 %vm462_vm1, %v62_v0 }
  0x3f   :  { %1043 = vmatprep.mubr.msk.bf16.mxu1 %vm1188_vm0, %v1187_v43  ;;  %1028 = vmatpush3.bf16.msra.mxu1 %v1116_v7 }
  0x40   :  { %1029 = vmatprep.subr.bf16.mxu1 %v1187_v43 }
  0x41   :  { %990 = vmatpush3.bf16.msra.mxu0 %v1106_v52  ;;  %v1126_v52 = vld [vmem:[%s1374_s5 + $0x10] sm:$0xff]  }
  0x42   :  { %991 = vmatprep.subr.bf16.mxu0 %v1107_v53  ;;  %v1127_v53 = vld [vmem:[%s1374_s5 + $0x18] sm:$0xff]  }
  0x43   :  { %1030 = vmatpush3.bf16.msra.mxu1 %v1117_v8 }
  0x44   :  { %1031 = vmatprep.subr.bf16.mxu1 %v1187_v43 }
  0x45   :  { %992 = vmatpush3.bf16.msra.mxu0 %v1108_v54  ;;  %v924_v54 = vld [vmem:[%s1373_s4] ss:$0 sm:$0xff]  ;;  %s1189_s4 = smov [#allocation5]  }
  0x46   :  { %993 = vmatprep.subr.bf16.mxu0 %v1109_v55  ;;  %s861_s5 = sshll.u32 %s1189_s4, 4  ;;  %s862_s5 = int_to_ptr.vmem [resolvable:$true] %s861_s5 }
  0x47   :  { %1032 = vmatpush3.bf16.msra.mxu1 %v1118_v9  ;;  %p1163_p9 = scmp.lt.s32.totalorder %s862_s5, %s862_s5 }
  0x48   :  { %1033 = vmatprep.subr.bf16.mxu1 %v1187_v43 }
  0x49   :  { %994 = vmatpush3.bf16.msra.mxu0 %v1110_v58 }
  0x4a   :  { %995 = vmatprep.subr.bf16.mxu0 %v1111_v59 }
  0x4b   :  { %1034 = vmatpush3.bf16.msra.mxu1 %v1119_v10 }
  0x4c   :  { %1035 = vmatprep.subr.bf16.mxu1 %v1187_v43 }
  0x4d   :  { %996 = vmatpush3.bf16.msra.mxu0 %v1112_v1 }
  0x4e   :  { %997 = vmatprep.subr.bf16.mxu0 %v1113_v2 }
  0x4f   :  { %1036 = vmatpush3.bf16.msra.mxu1 %v1120_v11 }
  0x50   :  { %1037 = vmatprep.subr.bf16.mxu1 %v1187_v43 }
  0x51   :  { %998 = vmatpush3.bf16.msra.mxu0 %v1114_v3 }
  0x52   :  { %1047 = vmatprep.subr.bf16.mxu0 %v1187_v43 }
  0x53   :  { %1038 = vmatpush3.bf16.msra.mxu1 %v1121_v12 }
  0x54   :  { %581 = vmatmul.mubr.bf16.vlgmr.msra.gmra.mrb[4].mxu0 %v60_v6  ;;  %1039 = vmatprep.subr.bf16.mxu1 %v1187_v43 }
  0x55   :  { %1055 = vmatprep.mubr.msk.bf16.mxu0 %vm1188_vm0, %v1187_v43  ;;  %1048 = vmatpush3.bf16.msra.mxu0 %v1124_v15 }
  0x56   :  { %1049 = vmatprep.subr.bf16.mxu0 %v1187_v43 }
  0x57   :  { %1040 = vmatpush3.bf16.msra.mxu1 %v1122_v13 }
  0x58   :  { %1041 = vmatprep.subr.bf16.mxu1 %v1187_v43 }
  0x59   :  { %1050 = vmatpush3.bf16.msra.mxu0 %v1125_v16 }
  0x5a   :  { %1051 = vmatprep.subr.bf16.mxu0 %v1187_v43 }
  0x5b   :  { %1042 = vmatpush3.bf16.msra.mxu1 %v1123_v14 }
  0x5d   :  { %1052 = vmatpush3.bf16.msra.mxu0 %v1126_v52 }
  0x5e   :  { %1053 = vmatprep.subr.bf16.mxu0 %v1187_v43  ;;  %v933_v43 = vld [vmem:[%s1375_s6] ss:$0 sm:$0xff]  ;;  %s1158_s6 = scalar_lea.vmem %s862_s5, 256 }
  0x5f   :  { %p1159_p8 = scmp.ne.s32.totalorder %s862_s5, %s1158_s6  ;;  %p1164_p10 = scmp.lt.s32.totalorder %s1158_s6, %s1158_s6 }
  0x61   :  { %1054 = vmatpush3.bf16.msra.mxu0 %v1127_v53  ;;  %p1165_p11 = por %p1164_p10, %p1163_p9 }
  0x63   :  { %p1166_p12 = pnand %p1165_p11, %p1159_p8 }
 0x107   :  { %v955_v17 = vpop.f32.mrb[0].mxu0 }
 0x108   :  { %v956_v19 = vpop.f32.mrb[1].mxu0 }
 0x109   :  { %v957_v20 = vadd.f32 %v956_v19, %v955_v17  ;;  %v958_v21 = vpop.f32.mrb[2].mxu0  ;;  %v977_v22 = vpop.f32.mrb[0].mxu1 }
 0x10a   :  { %v959_v23 = vpop.f32.mrb[3].mxu0  ;;  %v978_v26 = vpop.f32.mrb[1].mxu1 }
 0x10b   :  { %v501_v24 = vadd.f32 %v957_v20, %v873_v18  ;;  %v960_v25 = vadd.f32 %v959_v23, %v958_v21  ;;  %v979_v27 = vadd.f32 %v978_v26, %v977_v22  ;;  %v980_v28 = vpop.f32.mrb[2].mxu1 }
 0x10c   :  { %v981_v30 = vpop.f32.mrb[3].mxu1 }
 0x10d   :  { %v504_v29 = vadd.f32 %v960_v25, %v873_v18  ;;  %v542_v31 = vadd.f32 %v979_v27, %v501_v24  ;;  %v982_v32 = vadd.f32 %v981_v30, %v980_v28 }
 0x10f   :  { %v545_v33 = vadd.f32 %v982_v32, %v504_v29 }
 0x111   :  { %v623_v34 = vpop.f32.mrb[4].mxu1 }
 0x112   :  { %v1025_v35 = vpop.f32.mrb[5].mxu1 }
 0x113   :  { %v626_v36 = vpop.f32.mrb[6].mxu1 }
 0x114   :  { %v1026_v37 = vpop.f32.mrb[7].mxu1 }
 0x127   :  { %v999_v38 = vpop.f32.mrb[4].mxu0 }
 0x128   :  { %v1000_v39 = vpop.f32.mrb[5].mxu0 }
 0x129   :  { %v1001_v40 = vadd.f32 %v1000_v39, %v999_v38  ;;  %v1002_v41 = vpop.f32.mrb[6].mxu0 }
 0x12a   :  { %v1003_v42 = vpop.f32.mrb[7].mxu0 }
 0x12b   :  { %v583_v44 = vadd.f32 %v1001_v40, %v542_v31  ;;  %v1004_v45 = vadd.f32 %v1003_v42, %v1002_v41 }
 0x12d   :  { %v624_v46 = vadd.f32 %v623_v34, %v583_v44  ;;  %v586_v47 = vadd.f32 %v1004_v45, %v545_v33 }
 0x12f   :  { %v627_v48 = vadd.f32 %v626_v36, %v586_v47  ;;  %v630_v49 = vmax.f32 %v624_v46, 0.0 }
 0x131   :  { %v631_v50 = vmax.f32 %v627_v48, 0.0 }
 0x133   :  { %v632_v51 = vpack.c.bf16 %v631_v50, %v630_v49 }
 0x135   :  { %1044 = vmatmul.mubr.bf16.vlgmr.msra.gmra.mrb[8].mxu1 %v632_v51 }
 0x208   :  { %v738_v55 = vpop.f32.mrb[8].mxu1 }
 0x209   :  { %v739_v56 = vadd.f32 %v924_v54, %v738_v55  ;;  %v1045_v57 = vpop.f32.mrb[9].mxu1 }
 0x20a   :  { %v741_v58 = vpop.f32.mrb[10].mxu1 }
 0x20b   :  { %v742_v59 = vadd.f32 %v924_v54, %v741_v58  ;;  %v1046_v60 = vpop.f32.mrb[11].mxu1  ;;  %v745_v61 = vmax.f32 %v739_v56, 0.0 }
 0x20d   :  { %v746_v62 = vmax.f32 %v742_v59, 0.0 }
 0x20f   :  { %v747_v63 = vpack.c.bf16 %v746_v62, %v745_v61 }
 0x211   :  { %1056 = vmatmul.mubr.msk.bf16.vlgmr.msra.gmra.mrb[8].mxu0 %vm787_vm2, %v747_v63 }
 0x2e4   :  { %v825_v0 = vpop.f32.mrb[8].mxu0 }
 0x2e5   :  { %v826_v1 = vadd.f32 %v933_v43, %v825_v0  ;;  %v1057_v2 = vpop.f32.mrb[9].mxu0 }
 0x2e6   :  { %v828_v3 = vpop.f32.mrb[10].mxu0 }
 0x2e7   :  { %v829_v4 = vadd.f32 %v933_v43, %v828_v3  ;;  %v1058_v5 = vpop.f32.mrb[11].mxu0  ;;  %v832_v6 = vsel %vm462_vm1, %v826_v1, -inf }
 0x2e8   :  { %833 = vmax.xlane.f32.xlu0 %v832_v6 }
 0x2e9   :  { %v835_v7 = vsel %vm462_vm1, %v829_v4, -inf }
 0x2ec   :  { %836 = vmax.xlane.f32.xlu0 %v835_v7 }
 0x375   :  { %v834_v8 = vpop.xlane.xlu0 %833 }
 0x376   :  { %v838_v9 = vsub.f32 %v826_v1, %v834_v8 }
 0x378   :  { %v840_v10 = vmul.f32 1.442695, %v838_v9 }
 0x379   :  { %v837_v11 = vpop.xlane.xlu0 %836 }
 0x37a   :  { %1128 = vpow2.f32 %v840_v10  ;;  %v839_v12 = vsub.f32 %v829_v4, %v837_v11 }
 0x37c   :  { %v842_v13 = vmul.f32 1.442695, %v839_v12 }
 0x37e   :  { %1130 = vpow2.f32 %v842_v13 }
 0x384   :  { %v1129_v14 = vpop.eup %1128 }
 0x385   :  { %v844_v15 = vsel %vm462_vm1, %v1129_v14, 0.0 }
 0x386   :  { %845 = vadd.xlane.f32.xlu1 %v844_v15 }
 0x388   :  { %v1131_v16 = vpop.eup %1130 }
 0x389   :  { %v847_v17 = vsel %vm462_vm1, %v1131_v16, 0.0 }
 0x38a   :  { %848 = vadd.xlane.f32.xlu1 %v847_v17 }
 0x413   :  { %v846_v18 = vpop.xlane.xlu1 %845 }
 0x414   :  { %1132 = vrcp.f32 %v846_v18 }
 0x417   :  { %v849_v19 = vpop.xlane.xlu1 %848 }
 0x418   :  { %1134 = vrcp.f32 %v849_v19 }
 0x41e   :  { %v1133_v20 = vpop.eup %1132 }
 0x41f   :  { %v851_v21 = vmul.f32 %v1133_v20, %v1129_v14 }
 0x421   :  { %854 = vst.msk [vmem:[#allocation5] sm:$0xff] %vm462_vm1, %v851_v21 }
 0x422   :  { %v1135_v22 = vpop.eup %1134 }
 0x423   :  { %v853_v23 = vmul.f32 %v1135_v22, %v1131_v16 }
 0x425   :  { %855 = vst.msk [vmem:[#allocation5 + $0x8] sm:$0xff] %vm462_vm1, %v853_v23 }
 0x426   :  { %1169 = shalt.err (!%p1166_p12)
}
 0x427   :  { %s1170_s22 = scalar_lea.hbm %s1376_s7, 256 }
 0x428   :  { %p1171_p13 = scmp.ne.s32.totalorder %s1376_s7, %s1170_s22  ;;  %p1174_p0 = scmp.lt.u32.totalorder %s1170_s22, %s1376_s7 }
 0x42a   :  { %p1176_p1 = pnand %p1174_p0, %p1171_p13 }
 0x42c   :  { %1179 = shalt.err (!%p1176_p1)
}
 0x42d   :  { %s1190_s27 = smov 128   ;;  %s1191_s28 = smov 8  }
 0x42e   :  { %867 = dma.vmem_to_hbm [thread:$0]  %s862_s5, 256, %s1376_s7, [#allocation4], %s1190_s27, %s1190_s27, %s1191_s28  }
 0x42f   :  { %1182 = dma.done.wait [#allocation4], 256  }
 0x430   :  { %1183 = vsyncadd [#allocation4], 4294967040 }
 0x431   :  { %871 = vsyncpa [#allocation3], 1 }
 0x432   :  { %872 = vsyncpa [#allocation4], 1 }

</bundles_post_ra>
